<compile_context>
chip_gen: v7x
topology: tpu7x:2x2x1
jax: 0.10.0
libtpu: 0.0.40
codegen_flags: <defaults>
</compile_context>

<pallas_src>
import jax
import jax.numpy as jnp
from jax.experimental import pallas as pl
from jax.experimental.pallas import tpu as pltpu


def _round_up(x, m):
    return ((x + m - 1) // m) * m


def _choose_tm(batch, block_m):
    """Sublane-aligned batch tile; >=2 grid steps when batch allows (v7x megacore)."""
    tm = min(block_m, _round_up(batch, 8))
    if batch >= 16 and _round_up(batch, tm) // tm < 2:
        tm = _round_up((batch + 1) // 2, 8)
    return tm


def _mlp_kernel(x_ref, w1_ref, b1_ref, w2_ref, b2_ref, o_ref):
    # Hidden layer: (TM, F) @ (F, Hp) on the MXU, f32 accumulation.
    h = jnp.dot(x_ref[...], w1_ref[...], preferred_element_type=jnp.float32)
    h = jnp.maximum(h + b1_ref[...], 0.0)                 # f32 bias + ReLU (VPU)
    # Output layer: (TM, Hp) @ (Hp, Op), f32 accumulation; lanes stay MXU-aligned.
    y = jnp.dot(h.astype(w2_ref.dtype), w2_ref[...],
                preferred_element_type=jnp.float32)
    y = y + b2_ref[...]                                    # (TM, Op) padded, in-register
    # Narrow HBM write: store only the real O logits (masked vst, 64x fewer bytes).
    o_ref[...] = y[:, :o_ref.shape[1]].astype(o_ref.dtype)


def prepare_params(w1, b1, w2, b2, *, compute_dtype=jnp.float32):
    """One-time padding/casting of the weights (hoisted out of the forward call).

    Zero-padding H (and the matmul-side O) to lane multiples is mathematically
    exact: padded b1 lanes are 0, relu(0) = 0, padded w2 rows are 0.
    """
    n_feature, n_hidden = w1.shape
    n_output = w2.shape[1]
    hp = _round_up(n_hidden, 128)
    op = _round_up(n_output, 128)
    w1p = jnp.zeros((n_feature, hp), jnp.float32).at[:, :n_hidden].set(w1)
    w2p = jnp.zeros((hp, op), jnp.float32).at[:n_hidden, :n_output].set(w2)
    b1p = jnp.zeros((1, hp), jnp.float32).at[0, :n_hidden].set(b1)
    b2p = jnp.zeros((1, op), jnp.float32).at[0, :n_output].set(b2)
    return {
        "w1": w1p.astype(compute_dtype),
        "b1": b1p,                       # biases stay f32 (added to f32 accumulator)
        "w2": w2p.astype(compute_dtype),
        "b2": b2p,
        "n_output": n_output,
        "compute_dtype": compute_dtype,
    }


def net_forward(x, params, *, block_m=1024):
    """x: (B, F) float32. Returns logits (B, n_output) float32."""
    w1p, b1p, w2p, b2p = params["w1"], params["b1"], params["w2"], params["b2"]
    n_output = params["n_output"]
    compute_dtype = params["compute_dtype"]

    batch, n_feature = x.shape
    hp = w1p.shape[1]
    op = w2p.shape[1]

    tm = _choose_tm(batch, block_m)
    bp = _round_up(batch, tm)
    xp = x.astype(compute_dtype)
    if bp != batch:
        xp = jnp.zeros((bp, n_feature), compute_dtype).at[:batch].set(xp)
    grid = (bp // tm,)

    itemsize = lambda a: a.size * a.dtype.itemsize
    cost = pl.CostEstimate(
        flops=2 * bp * (n_feature * hp + hp * op),
        transcendentals=0,
        bytes_accessed=int(itemsize(xp) + itemsize(w1p) + itemsize(b1p)
                           + itemsize(w2p) + itemsize(b2p) + bp * n_output * 4),
    )

    resident = pl.Buffered(1)   # grid-invariant operands: no double-buffering needed

    out = pl.pallas_call(
        _mlp_kernel,
        out_shape=jax.ShapeDtypeStruct((bp, n_output), jnp.float32),
        grid=grid,
        in_specs=[
            pl.BlockSpec((tm, n_feature), lambda i: (i, 0)),   # x streams over batch
            pl.BlockSpec((n_feature, hp), lambda i: (0, 0), pipeline_mode=resident),
            pl.BlockSpec((1, hp), lambda i: (0, 0), pipeline_mode=resident),
            pl.BlockSpec((hp, op), lambda i: (0, 0), pipeline_mode=resident),
            pl.BlockSpec((1, op), lambda i: (0, 0), pipeline_mode=resident),
        ],
        out_specs=pl.BlockSpec((tm, n_output), lambda i: (i, 0)),  # narrow output block
        compiler_params=pltpu.CompilerParams(
            dimension_semantics=("parallel",),       # shard batch across v7x cores
            vmem_limit_bytes=32 * 1024 * 1024,
        ),
        cost_estimate=cost,
    )(xp, w1p, b1p, w2p, b2p)

    return out if bp == batch else out[:batch]


def init_params(key, n_feature, n_hidden, n_output):
    # Mimic torch.nn.Linear default init U(-1/sqrt(in), 1/sqrt(in)).
    k1, k2, k3, k4 = jax.random.split(key, 4)
    lim1 = 1.0 / jnp.sqrt(jnp.float32(n_feature))
    lim2 = 1.0 / jnp.sqrt(jnp.float32(n_hidden))
    w1 = jax.random.uniform(k1, (n_feature, n_hidden), jnp.float32, -lim1, lim1)
    b1 = jax.random.uniform(k2, (n_hidden,), jnp.float32, -lim1, lim1)
    w2 = jax.random.uniform(k3, (n_hidden, n_output), jnp.float32, -lim2, lim2)
    b2 = jax.random.uniform(k4, (n_output,), jnp.float32, -lim2, lim2)
    return w1, b1, w2, b2


if __name__ == "__main__":
    # Shapes implied by the script: 2-D features, 2 output classes, small hidden.
    n_feature, n_hidden, n_output = 2, 32, 2
    batch = 8

    key = jax.random.PRNGKey(0)
    kx, kp = jax.random.split(key)

    # Synthetic data like the script: half centered at +2, half at -2.
    half = batch // 2
    x0 = 2.0 + jax.random.normal(kx, (half, n_feature), jnp.float32)
    x1 = -2.0 + jax.random.normal(jax.random.fold_in(kx, 1),
                                  (half, n_feature), jnp.float32)
    x = jnp.concatenate([x0, x1], axis=0)

    w1, b1, w2, b2 = init_params(kp, n_feature, n_hidden, n_output)

    # Pure-JAX reference.
    ref = jnp.maximum(x @ w1 + b1, 0.0) @ w2 + b2

    # f32 path — matches the PyTorch module semantics exactly.
    params_f32 = prepare_params(w1, b1, w2, b2, compute_dtype=jnp.float32)
    out = jax.block_until_ready(net_forward(x, params_f32))
    assert out.shape == (batch, n_output)
    assert jnp.allclose(out, ref, atol=1e-5, rtol=1e-5)

    # bf16 operand path (bf16 MXU on v5e/v6e/v7x; f32 accumulation + f32 elementwise).
    params_bf16 = prepare_params(w1, b1, w2, b2, compute_dtype=jnp.bfloat16)
    out_bf16 = jax.block_until_ready(net_forward(x, params_bf16))
    assert jnp.allclose(out_bf16, ref, atol=5e-2, rtol=5e-2)

    print("KERNEL_OK")
</pallas_src>

<mosaic_0001>
module attributes {stable_mosaic.version = 11 : i64} {
  func.func @_mlp_kernel(%arg0: i32, %arg1: memref<8x2xf32, #tpu.memory_space<vmem>>, %arg2: memref<2x128xf32, #tpu.memory_space<vmem>>, %arg3: memref<1x128xf32, #tpu.memory_space<vmem>>, %arg4: memref<128x128xf32, #tpu.memory_space<vmem>>, %arg5: memref<1x128xf32, #tpu.memory_space<vmem>>, %arg6: memref<8x2xf32, #tpu.memory_space<vmem>>) attributes {dimension_semantics = [#tpu.dimension_semantics<parallel>], iteration_bounds = array<i64: 1>, scalar_prefetch = 0 : i64, scratch_operands = 0 : i64, tpu.core_type = #tpu.core_type<tc>, window_params = [{transform_indices = @transform_0, window_bounds = array<i64: 8, 2>}, {pipeline_mode = #tpu.pipeline_mode<synchronous>, transform_indices = @transform_1, window_bounds = array<i64: 2, 128>}, {pipeline_mode = #tpu.pipeline_mode<synchronous>, transform_indices = @transform_2, window_bounds = array<i64: 1, 128>}, {pipeline_mode = #tpu.pipeline_mode<synchronous>, transform_indices = @transform_3, window_bounds = array<i64: 128, 128>}, {pipeline_mode = #tpu.pipeline_mode<synchronous>, transform_indices = @transform_4, window_bounds = array<i64: 1, 128>}, {transform_indices = @transform_5, window_bounds = array<i64: 8, 2>}]} {
    %c0 = arith.constant 0 : index
    %c0_0 = arith.constant 0 : index
    %0 = vector.load %arg1[%c0, %c0_0] : memref<8x2xf32, #tpu.memory_space<vmem>>, vector<8x2xf32>
    %c0_1 = arith.constant 0 : index
    %c0_2 = arith.constant 0 : index
    %1 = vector.load %arg2[%c0_1, %c0_2] : memref<2x128xf32, #tpu.memory_space<vmem>>, vector<2x128xf32>
    %cst = arith.constant dense<0.000000e+00> : vector<8x128xf32>
    %2 = tpu.matmul %0, %1, %cst {dimension_numbers = #tpu.dot_dimension_numbers<[1], [0], [0], [1], [0, 0, 1, 1], [], []>} : vector<8x2xf32>, vector<2x128xf32>, vector<8x128xf32> -> vector<8x128xf32>
    %c0_3 = arith.constant 0 : index
    %c0_4 = arith.constant 0 : index
    %3 = vector.load %arg3[%c0_3, %c0_4] : memref<1x128xf32, #tpu.memory_space<vmem>>, vector<1x128xf32>
    %4 = vector.broadcast %3 : vector<1x128xf32> to vector<8x128xf32>
    %5 = arith.addf %2, %4 : vector<8x128xf32>
    %cst_5 = arith.constant 0.000000e+00 : f32
    %6 = vector.broadcast %cst_5 : f32 to vector<8x128xf32>
    %7 = arith.maximumf %5, %6 : vector<8x128xf32>
    %c0_6 = arith.constant 0 : index
    %c0_7 = arith.constant 0 : index
    %8 = vector.load %arg4[%c0_6, %c0_7] : memref<128x128xf32, #tpu.memory_space<vmem>>, vector<128x128xf32>
    %cst_8 = arith.constant dense<0.000000e+00> : vector<8x128xf32>
    %9 = tpu.matmul %7, %8, %cst_8 {dimension_numbers = #tpu.dot_dimension_numbers<[1], [0], [0], [1], [0, 0, 1, 1], [], []>} : vector<8x128xf32>, vector<128x128xf32>, vector<8x128xf32> -> vector<8x128xf32>
    %c0_9 = arith.constant 0 : index
    %c0_10 = arith.constant 0 : index
    %10 = vector.load %arg5[%c0_9, %c0_10] : memref<1x128xf32, #tpu.memory_space<vmem>>, vector<1x128xf32>
    %11 = vector.broadcast %10 : vector<1x128xf32> to vector<8x128xf32>
    %12 = arith.addf %9, %11 : vector<8x128xf32>
    %13 = vector.extract_strided_slice %12 {offsets = [0, 0], sizes = [8, 2], strides = [1, 1]} : vector<8x128xf32> to vector<8x2xf32>
    %c0_11 = arith.constant 0 : index
    %c0_12 = arith.constant 0 : index
    %14 = vector.load %arg6[%c0_11, %c0_12] : memref<8x2xf32, #tpu.memory_space<vmem>>, vector<8x2xf32>
    tpu.vector_store %arg6[%c0_11, %c0_12], %13 {strides = array<i32>} : memref<8x2xf32, #tpu.memory_space<vmem>>, vector<8x2xf32>,
    return
  }
  func.func @transform_0(%arg0: i32) -> (i32, i32) {
    %c0_i32 = arith.constant 0 : i32
    %c0_i32_0 = arith.constant 0 : i32
    return %arg0, %c0_i32 : i32, i32
  }
  func.func @transform_1(%arg0: i32) -> (i32, i32) {
    %c0_i32 = arith.constant 0 : i32
    %c0_i32_0 = arith.constant 0 : i32
    %c0_i32_1 = arith.constant 0 : i32
    return %c0_i32, %c0_i32_0 : i32, i32
  }
  func.func @transform_2(%arg0: i32) -> (i32, i32) {
    %c0_i32 = arith.constant 0 : i32
    %c0_i32_0 = arith.constant 0 : i32
    %c0_i32_1 = arith.constant 0 : i32
    return %c0_i32, %c0_i32_0 : i32, i32
  }
  func.func @transform_3(%arg0: i32) -> (i32, i32) {
    %c0_i32 = arith.constant 0 : i32
    %c0_i32_0 = arith.constant 0 : i32
    %c0_i32_1 = arith.constant 0 : i32
    return %c0_i32, %c0_i32_0 : i32, i32
  }
  func.func @transform_4(%arg0: i32) -> (i32, i32) {
    %c0_i32 = arith.constant 0 : i32
    %c0_i32_0 = arith.constant 0 : i32
    %c0_i32_1 = arith.constant 0 : i32
    return %c0_i32, %c0_i32_0 : i32, i32
  }
  func.func @transform_5(%arg0: i32) -> (i32, i32) {
    %c0_i32 = arith.constant 0 : i32
    %c0_i32_0 = arith.constant 0 : i32
    return %arg0, %c0_i32 : i32, i32
  }
}

</mosaic_0001>

<bundles_post_ra>
// kernel: tpu_custom_call.1
= control target key start
LH: loop header
LB: loop body
LE: loop exit
PB: predicated region body
PF: predicated region fallthrough
CT: control target
= control target key end

     0   :  { %10 = vsyncpa [#allocation3], 0  ;;  %s338_s18 = smov [#allocation2]   ;;  %s403_s0 = inlined_call_operand.vmem [shape: f32[8,2], index: 0, kind: input, shape index: {}]   ;;  %s404_s1 = inlined_call_operand.vmem [shape: f32[2,128], index: 1, kind: input, shape index: {}]   ;;  %s405_s2 = inlined_call_operand.vmem [shape: f32[1,128], index: 2, kind: input, shape index: {}]   ;;  %s406_s3 = inlined_call_operand.hbm [shape: f32[128,128], index: 3, kind: input, shape index: {}]   ;;  %s407_s4 = inlined_call_operand.vmem [shape: f32[1,128], index: 4, kind: input, shape index: {}]   ;;  %s408_s5 = inlined_call_operand.vmem [shape: f32[8,2], index: 5, kind: output, shape index: {}]  }
   0x1   :  { %s22_s19 = sshll.u32 %s338_s18, 4  ;;  %s314_s22 = scalar_lea.hbm %s406_s3, 2048  ;;  %s23_s19 = int_to_ptr.vmem [resolvable:$true] %s22_s19 }
   0x2   :  { %p315_p0 = scmp.ne.s32.totalorder %s406_s3, %s314_s22  ;;  %p318_p1 = scmp.lt.u32.totalorder %s314_s22, %s406_s3 }
   0x4   :  { %p320_p2 = pnand %p318_p1, %p315_p0 }
   0x6   :  { %323 = shalt.err (!%p320_p2)
}
   0x7   :  { %s324_s27 = scalar_lea.vmem %s23_s19, 2048  ;;  %p329_p4 = scmp.lt.s32.totalorder %s23_s19, %s23_s19 }
   0x8   :  { %p325_p3 = scmp.ne.s32.totalorder %s23_s19, %s324_s27  ;;  %p330_p5 = scmp.lt.s32.totalorder %s324_s27, %s324_s27 }
   0xa   :  { %p331_p6 = por %p330_p5, %p329_p4 }
   0xc   :  { %p332_p7 = pnand %p331_p6, %p325_p3 }
   0xe   :  { %335 = shalt.err (!%p332_p7)
}
   0xf   :  { %s339_s28 = smov 128   ;;  %s340_s29 = smov 8  }
  0x10   :  { %28 = dma.hbm_to_vmem [thread:$0]  %s406_s3, 2048, %s23_s19, [#allocation3], %s339_s28, %s339_s28, %s340_s29  }
  0x11   :  { %336 = dma.done.wait [#allocation3], 2048  }
  0x12   :  { %337 = vsyncadd [#allocation3], 4294965248  ;;  %v341_v0 = vmov 0.0   ;;  %vm342_vm0 = vmmov 0   ;;  %v343_v1 = vmov 0.0|0.0   ;;  %vm47_vm1 = vcmask 1041408  }
  0x13   :  { %244 = vmatprep.subr.mxu0 %v341_v0  ;;  %246 = vmatprep.mubr.msk.f32.mxu0 %vm342_vm0, %v341_v0  ;;  %vm43_vm2 = vcmask 15360   ;;  %v35_v2 = vld [vmem:[%s404_s1] sm:$0x3]  ;;  %v123_v5 = vld [vmem:[#allocation2 + $0x8] sm:$0xff]  ;;  %v124_v6 = vld [vmem:[#allocation2 + $0x10] sm:$0xff] }
  0x14   :  { %284 = vmatprep.subr.bf16.mxu1 %v343_v1  ;;  %281 = vmatprep.mubr.msk.f32.mxu1 %vm342_vm0, %v341_v0  ;;  %v34_v3 = vld [vmem:[%s403_s0] sm:$0xff]  ;;  %v125_v7 = vld [vmem:[#allocation2 + $0x18] sm:$0xff]  ;;  %v127_v11 = vld [vmem:[#allocation2 + $0x28] sm:$0xff] }
  0x15   :  { %v122_v4 = vld [vmem:[#allocation2] sm:$0xff]  ;;  %245 = vmatpush3.msk.msra.mxu0 %vm47_vm1, %v35_v2  ;;  %v288_v9 = vpack.c.bf16 %v125_v7, %v124_v6  ;;  %v128_v13 = vld [vmem:[#allocation2 + $0x30] sm:$0xff]  ;;  %v129_v14 = vld [vmem:[#allocation2 + $0x38] sm:$0xff] }
  0x16   :  { %247 = vmatmul.mubr.msk.f32.vlgmr.msra.gmra.mrb[0].mxu0 %vm43_vm2, %v34_v3  ;;  %v285_v8 = vpack.c.bf16 %v123_v5, %v122_v4  ;;  %v126_v10 = vld [vmem:[#allocation2 + $0x20] sm:$0xff]  ;;  %v294_v15 = vpack.c.bf16 %v129_v14, %v128_v13  ;;  %v131_v17 = vld [vmem:[#allocation2 + $0x48] sm:$0xff]  ;;  %v132_v19 = vld [vmem:[#allocation2 + $0x50] sm:$0xff] }
  0x17   :  { %v291_v12 = vpack.c.bf16 %v127_v11, %v126_v10  ;;  %v130_v16 = vld [vmem:[#allocation2 + $0x40] sm:$0xff]  ;;  %v133_v20 = vld [vmem:[#allocation2 + $0x58] sm:$0xff]  ;;  %v135_v23 = vld [vmem:[#allocation2 + $0x68] sm:$0xff] }
  0x18   :  { %286 = vmatpush3.bf16.msra.mxu1 %v285_v8  ;;  %v297_v18 = vpack.c.bf16 %v131_v17, %v130_v16  ;;  %v300_v21 = vpack.c.bf16 %v133_v20, %v132_v19  ;;  %v134_v22 = vld [vmem:[#allocation2 + $0x60] sm:$0xff]  ;;  %v136_v25 = vld [vmem:[#allocation2 + $0x70] sm:$0xff]  ;;  %v137_v26 = vld [vmem:[#allocation2 + $0x78] sm:$0xff] }
  0x19   :  { %287 = vmatprep.subr.bf16.mxu1 %v343_v1  ;;  %v303_v24 = vpack.c.bf16 %v135_v23, %v134_v22  ;;  %v306_v27 = vpack.c.bf16 %v137_v26, %v136_v25  ;;  %v221_v28 = vld [vmem:[%s405_s2] ss:$0 sm:$0xff] }
  0x1a   :  { %v224_v33 = vld [vmem:[%s407_s4] ss:$0 sm:$0xff] }
  0x1c   :  { %289 = vmatpush3.bf16.msra.mxu1 %v288_v9 }
  0x1d   :  { %290 = vmatprep.subr.bf16.mxu1 %v343_v1 }
  0x20   :  { %292 = vmatpush3.bf16.msra.mxu1 %v291_v12 }
  0x21   :  { %293 = vmatprep.subr.bf16.mxu1 %v343_v1 }
  0x24   :  { %295 = vmatpush3.bf16.msra.mxu1 %v294_v15 }
  0x25   :  { %296 = vmatprep.subr.bf16.mxu1 %v343_v1 }
  0x28   :  { %298 = vmatpush3.bf16.msra.mxu1 %v297_v18 }
  0x29   :  { %299 = vmatprep.subr.bf16.mxu1 %v343_v1 }
  0x2c   :  { %301 = vmatpush3.bf16.msra.mxu1 %v300_v21 }
  0x2d   :  { %302 = vmatprep.subr.bf16.mxu1 %v343_v1 }
  0x30   :  { %304 = vmatpush3.bf16.msra.mxu1 %v303_v24 }
  0x31   :  { %305 = vmatprep.subr.bf16.mxu1 %v343_v1 }
  0x34   :  { %307 = vmatpush3.bf16.msra.mxu1 %v306_v27 }
  0xe9   :  { %v117_v29 = vpop.f32.mrb[0].mxu0 }
  0xea   :  { %v118_v30 = vadd.f32 %v221_v28, %v117_v29  ;;  %v248_v31 = vpop.f32.mrb[1].mxu0 }
  0xec   :  { %v121_v32 = vmax.f32 %v118_v30, 0.0 }
  0xee   :  { %282 = vmatmul.mubr.f32.vlgmr.msra.gmra.mrb[0].mxu1 %v121_v32 }
 0x1c1   :  { %v211_v34 = vpop.f32.mrb[0].mxu1 }
 0x1c2   :  { %v212_v35 = vadd.f32 %v224_v33, %v211_v34  ;;  %v283_v36 = vpop.f32.mrb[1].mxu1 }
 0x1c4   :  { %215 = vst.msk [vmem:[%s408_s5] sm:$0xff] %vm43_vm2, %v212_v35 }
 0x1c5   :  { %220 = vsyncpa [#allocation3], 1 }

</bundles_post_ra>
